<compile_context>
chip_gen: v5e
topology: v5e:2x2
jax: 0.10.0
libtpu: 0.0.40
codegen_flags: <defaults>
</compile_context>

<pallas_src>
import jax
import jax.numpy as jnp
from jax.experimental import pallas as pl
from jax.experimental.pallas import tpu as pltpu


def _leaky_relu(x, slope=0.1):
    return jnp.where(x >= 0, x, slope * x)


# ---------------------------------------------------------------------------
# Fused kernel: (when batch index == 0) compute the bias tile for the current
# NN tile into VMEM scratch, then add it to the x tile for every batch element.
#   rel_ref : (2, T)       f32    -- lane tile of the NN = n*n axis (transposed table)
#   w1_ref  : (dim, 2)     f32    -- nn.Linear(2, dim).weight  (out, in)
#   b1_ref  : (dim, 1)     f32
#   w2_ref  : (dim, dim)   f32
#   b2_ref  : (dim, 1)     f32
#   w3_ref  : (heads, dim) f32
#   b3_ref  : (heads, 1)   f32
#   x_ref   : (1, H, T)    x.dtype
#   out_ref : (1, H, T)    x.dtype
#   bias_scr: (H, T)       f32 VMEM scratch, persists across the inner batch axis
# ---------------------------------------------------------------------------
def _fused_bias_add_kernel(rel_ref, w1_ref, b1_ref, w2_ref, b2_ref, w3_ref, b3_ref,
                           x_ref, out_ref, bias_scr):
    dim = w2_ref.shape[0]

    @pl.when(pl.program_id(1) == 0)            # batch index 0: (re)compute bias tile
    def _():
        rel = rel_ref[...]                                        # (2, T)
        # Layer 1 (K = 2): two broadcast FMAs on the VPU (a K=2 MXU op would pad to 128+).
        h = (w1_ref[:, 0:1] * rel[0:1, :]
             + w1_ref[:, 1:2] * rel[1:2, :]
             + b1_ref[...])                                       # (dim, T)
        h = _leaky_relu(h)
        # Layer 2 (dim x dim): the only matmul worth the MXU.  bf16 operands only when
        # dim is large enough to matter (v6e/v7x); accumulation stays f32 either way.
        if dim >= 256:                                            # static trace-time choice
            h = jnp.dot(w2_ref[...].astype(jnp.bfloat16), h.astype(jnp.bfloat16),
                        preferred_element_type=jnp.float32) + b2_ref[...]
        else:
            h = jnp.dot(w2_ref[...], h, preferred_element_type=jnp.float32) + b2_ref[...]
        h = _leaky_relu(h)
        # Layer 3 (dim -> heads): lane-dense along T; kept in f32 VMEM (no HBM
        # round-trip, no double rounding when x is bf16).
        bias_scr[...] = (jnp.dot(w3_ref[...], h, preferred_element_type=jnp.float32)
                         + b3_ref[...])                           # (H, T)

    # Broadcast add in f32, single cast on the (lane-dense) store.
    out_ref[...] = (x_ref[...].astype(jnp.float32) + bias_scr[...][None]).astype(out_ref.dtype)


# ----------------------------- host-side glue ------------------------------
def make_rel_pos_t(fmap_size):
    """Signed-log relative positions, transposed: (2, n*n) with n = fmap_size**2."""
    pos = jnp.arange(fmap_size, dtype=jnp.float32)
    gi, gj = jnp.meshgrid(pos, pos, indexing="ij")
    grid = jnp.stack([gi, gj], axis=-1).reshape(-1, 2)            # '(i j) c'
    rel = grid[:, None, :] - grid[None, :, :]                     # (n, n, 2)
    rel = jnp.sign(rel) * jnp.log(jnp.abs(rel) + 1.0)
    return rel.reshape(-1, 2).T.astype(jnp.float32)               # (2, n*n)


def _pick_nn_tile(nn_, heads, dim, x_itemsize, vmem_budget=20 * 1024 * 1024):
    """Largest lane tile along NN that keeps live VMEM under `vmem_budget`.

    Conservative per-element budget: x in/out blocks double-buffered, rel block
    double-buffered, f32 bias scratch, and two live (dim, T) f32 MLP intermediates.
    """
    per = (2 * heads * x_itemsize       # x block, double-buffered
           + 2 * heads * x_itemsize     # out block, double-buffered
           + 2 * 2 * 4                  # rel block, double-buffered
           + heads * 4                  # bias scratch
           + 2 * dim * 4)               # live MLP intermediates
    cap = max(128, (vmem_budget // per) // 128 * 128)
    if nn_ <= cap:
        return nn_                       # single full-extent block (always a legal shape)
    t = cap
    while t >= 128:                      # prefer an exact divisor: no masked stores
        if nn_ % t == 0:
            return t
        t -= 128
    return cap                           # non-divisible NN: cdiv grid, masked last block only


def continuous_position_bias(x, params):
    """x: (B, H, n, n).  params: PyTorch-Linear-style (w:(out,in), b:(out,)) x3."""
    w1, b1, w2, b2, w3, b3 = params
    B, H, n, n_ = x.shape
    assert n == n_, "expected square attention map"
    fmap = int(round(n ** 0.5))
    assert fmap * fmap == n
    dim = w1.shape[0]
    heads = w3.shape[0]
    assert heads == H

    f32 = jnp.float32
    w1 = w1.astype(f32); w2 = w2.astype(f32); w3 = w3.astype(f32)
    b1 = b1.reshape(dim, 1).astype(f32)
    b2 = b2.reshape(dim, 1).astype(f32)
    b3 = b3.reshape(heads, 1).astype(f32)

    rel_t = make_rel_pos_t(fmap)                  # (2, NN), NN = n*n
    nn_ = rel_t.shape[1]

    x_itemsize = jnp.dtype(x.dtype).itemsize
    x_flat = x.reshape(B, H, nn_)                 # free: contiguous reshape
    T = _pick_nn_tile(nn_, heads, dim, x_itemsize)
    nt = pl.cdiv(nn_, T)

    full = lambda t, b: (0, 0)                    # weights stay VMEM-resident across the grid
    weight_bytes = 4 * (2 * dim + dim + dim * dim + dim + heads * dim + heads)
    cost = pl.CostEstimate(
        flops=nn_ * (4 * dim + 2 * dim * dim + 2 * dim * heads) + B * H * nn_,
        transcendentals=0,
        bytes_accessed=2 * B * H * nn_ * x_itemsize + 2 * nn_ * 4 + weight_bytes,
    )

    out_flat = pl.pallas_call(
        _fused_bias_add_kernel,
        grid=(nt, B),                             # batch innermost: bias tile computed once per NN tile
        in_specs=[
            pl.BlockSpec((2, T), lambda t, b: (0, t)),
            pl.BlockSpec(w1.shape, full),
            pl.BlockSpec(b1.shape, full),
            pl.BlockSpec(w2.shape, full),
            pl.BlockSpec(b2.shape, full),
            pl.BlockSpec(w3.shape, full),
            pl.BlockSpec(b3.shape, full),
            pl.BlockSpec((1, H, T), lambda t, b: (b, 0, t)),
        ],
        out_specs=pl.BlockSpec((1, H, T), lambda t, b: (b, 0, t)),
        out_shape=jax.ShapeDtypeStruct((B, H, nn_), x.dtype),
        scratch_shapes=[pltpu.VMEM((heads, T), jnp.float32)],
        compiler_params=pltpu.CompilerParams(
            dimension_semantics=("parallel", "arbitrary"),
            vmem_limit_bytes=32 * 1024 * 1024,    # covers v5e's 16 MiB scoped default, fits v7x physical
        ),
        cost_estimate=cost,
    )(rel_t, w1, b1, w2, b2, w3, b3, x_flat)

    return out_flat.reshape(B, H, n, n)


if __name__ == "__main__":
    # Small shapes consistent with the forward: N = fmap_size**2 = 16, heads = 4
    B, H, DIM, N = 2, 4, 32, 16

    key = jax.random.PRNGKey(0)
    ks = jax.random.split(key, 7)
    x = jax.random.normal(ks[0], (B, H, N, N), dtype=jnp.float32)

    def linear_init(kw, kb, fan_in, fan_out):
        # deterministic, PyTorch-Linear-style uniform(-1/sqrt(fan_in), 1/sqrt(fan_in))
        bound = 1.0 / (fan_in ** 0.5)
        w = jax.random.uniform(kw, (fan_out, fan_in), minval=-bound, maxval=bound,
                               dtype=jnp.float32)
        b = jax.random.uniform(kb, (fan_out,), minval=-bound, maxval=bound,
                               dtype=jnp.float32)
        return w, b

    w1, b1 = linear_init(ks[1], ks[2], 2, DIM)     # nn.Linear(2, dim)
    w2, b2 = linear_init(ks[3], ks[4], DIM, DIM)   # nn.Linear(dim, dim)
    w3, b3 = linear_init(ks[5], ks[6], DIM, H)     # nn.Linear(dim, heads)

    out = continuous_position_bias(x, (w1, b1, w2, b2, w3, b3))
    jax.block_until_ready(out)
    assert out.shape == (B, H, N, N) and out.dtype == jnp.float32

    # pure-JAX reference (row-major layout, same math)
    fmap = int(round(N ** 0.5))
    pos = jnp.arange(fmap, dtype=jnp.float32)
    gi, gj = jnp.meshgrid(pos, pos, indexing="ij")
    g = jnp.stack([gi, gj], axis=-1).reshape(-1, 2)
    rel = g[:, None, :] - g[None, :, :]
    rel = (jnp.sign(rel) * jnp.log(jnp.abs(rel) + 1.0)).reshape(-1, 2)
    lrelu = lambda v: jnp.where(v >= 0, v, 0.1 * v)
    h = lrelu(rel @ w1.T + b1)
    h = lrelu(h @ w2.T + b2)
    h = h @ w3.T + b3                                            # (N*N, H)
    bias_ref = h.reshape(N, N, H).transpose(2, 0, 1)             # 'i j h -> h i j'
    ref = x + bias_ref[None]
    max_err = jnp.max(jnp.abs(out - ref))
    assert jnp.allclose(out, ref, atol=5e-2, rtol=5e-2), f"max abs err {max_err:.3e}"

    print("KERNEL_OK")
</pallas_src>

<mosaic_0001>
module attributes {stable_mosaic.version = 11 : i64} {
  func.func @_fused_bias_add_kernel(%arg0: i32, %arg1: i32, %arg2: memref<2x256xf32, #tpu.memory_space<vmem>>, %arg3: memref<32x2xf32, #tpu.memory_space<vmem>>, %arg4: memref<32x1xf32, #tpu.memory_space<vmem>>, %arg5: memref<32x32xf32, #tpu.memory_space<vmem>>, %arg6: memref<32x1xf32, #tpu.memory_space<vmem>>, %arg7: memref<4x32xf32, #tpu.memory_space<vmem>>, %arg8: memref<4x1xf32, #tpu.memory_space<vmem>>, %arg9: memref<1x4x256xf32, #tpu.memory_space<vmem>>, %arg10: memref<1x4x256xf32, #tpu.memory_space<vmem>>, %arg11: memref<4x256xf32, #tpu.memory_space<vmem>>) attributes {dimension_semantics = [#tpu.dimension_semantics<parallel>, #tpu.dimension_semantics<arbitrary>], iteration_bounds = array<i64: 1, 2>, scalar_prefetch = 0 : i64, scratch_operands = 1 : i64, tpu.core_type = #tpu.core_type<tc>, window_params = [{transform_indices = @transform_0, window_bounds = array<i64: 2, 256>}, {pipeline_mode = #tpu.pipeline_mode<synchronous>, transform_indices = @transform_1, window_bounds = array<i64: 32, 2>}, {pipeline_mode = #tpu.pipeline_mode<synchronous>, transform_indices = @transform_2, window_bounds = array<i64: 32, 1>}, {pipeline_mode = #tpu.pipeline_mode<synchronous>, transform_indices = @transform_3, window_bounds = array<i64: 32, 32>}, {pipeline_mode = #tpu.pipeline_mode<synchronous>, transform_indices = @transform_4, window_bounds = array<i64: 32, 1>}, {pipeline_mode = #tpu.pipeline_mode<synchronous>, transform_indices = @transform_5, window_bounds = array<i64: 4, 32>}, {pipeline_mode = #tpu.pipeline_mode<synchronous>, transform_indices = @transform_6, window_bounds = array<i64: 4, 1>}, {transform_indices = @transform_7, window_bounds = array<i64: 1, 4, 256>}, {transform_indices = @transform_8, window_bounds = array<i64: 1, 4, 256>}]} {
    %c0_i32 = arith.constant 0 : i32
    %0 = arith.cmpi eq, %arg1, %c0_i32 : i32
    %1 = arith.extui %0 : i1 to i32
    %c0_i32_0 = arith.constant 0 : i32
    %2 = arith.cmpi ne, %1, %c0_i32_0 : i32
    scf.if %2 {
      %c0_8 = arith.constant 0 : index
      %c0_9 = arith.constant 0 : index
      %8 = vector.load %arg2[%c0_8, %c0_9] : memref<2x256xf32, #tpu.memory_space<vmem>>, vector<2x256xf32>
      %c0_10 = arith.constant 0 : index
      %c0_11 = arith.constant 0 : index
      %9 = vector.load %arg3[%c0_10, %c0_11] : memref<32x2xf32, #tpu.memory_space<vmem>>, vector<32x1xf32>
      %10 = vector.extract_strided_slice %8 {offsets = [0, 0], sizes = [1, 256], strides = [1, 1]} : vector<2x256xf32> to vector<1x256xf32>
      %11 = vector.broadcast %9 : vector<32x1xf32> to vector<32x256xf32>
      %12 = vector.broadcast %10 : vector<1x256xf32> to vector<32x256xf32>
      %13 = arith.mulf %11, %12 : vector<32x256xf32>
      %c0_12 = arith.constant 0 : index
      %c1 = arith.constant 1 : index
      %14 = vector.load %arg3[%c0_12, %c1] : memref<32x2xf32, #tpu.memory_space<vmem>>, vector<32x1xf32>
      %15 = vector.extract_strided_slice %8 {offsets = [1, 0], sizes = [1, 256], strides = [1, 1]} : vector<2x256xf32> to vector<1x256xf32>
      %16 = vector.broadcast %14 : vector<32x1xf32> to vector<32x256xf32>
      %17 = vector.broadcast %15 : vector<1x256xf32> to vector<32x256xf32>
      %18 = arith.mulf %16, %17 : vector<32x256xf32>
      %19 = arith.addf %13, %18 : vector<32x256xf32>
      %c0_13 = arith.constant 0 : index
      %c0_14 = arith.constant 0 : index
      %20 = vector.load %arg4[%c0_13, %c0_14] : memref<32x1xf32, #tpu.memory_space<vmem>>, vector<32x1xf32>
      %21 = vector.broadcast %20 : vector<32x1xf32> to vector<32x256xf32>
      %22 = arith.addf %19, %21 : vector<32x256xf32>
      %cst = arith.constant 0.000000e+00 : f32
      %23 = vector.broadcast %cst : f32 to vector<32x256xf32>
      %24 = arith.cmpf oge, %22, %23 : vector<32x256xf32>
      %cst_15 = arith.constant 1.000000e-01 : f32
      %25 = vector.broadcast %cst_15 : f32 to vector<32x256xf32>
      %26 = arith.mulf %25, %22 : vector<32x256xf32>
      %27 = arith.select %24, %22, %26 : vector<32x256xi1>, vector<32x256xf32>
      %c0_16 = arith.constant 0 : index
      %c0_17 = arith.constant 0 : index
      %28 = vector.load %arg5[%c0_16, %c0_17] : memref<32x32xf32, #tpu.memory_space<vmem>>, vector<32x32xf32>
      %cst_18 = arith.constant dense<0.000000e+00> : vector<32x256xf32>
      %29 = tpu.matmul %28, %27, %cst_18 {dimension_numbers = #tpu.dot_dimension_numbers<[1], [0], [0], [1], [0, 0, 1, 1], [], []>} : vector<32x32xf32>, vector<32x256xf32>, vector<32x256xf32> -> vector<32x256xf32>
      %c0_19 = arith.constant 0 : index
      %c0_20 = arith.constant 0 : index
      %30 = vector.load %arg6[%c0_19, %c0_20] : memref<32x1xf32, #tpu.memory_space<vmem>>, vector<32x1xf32>
      %31 = vector.broadcast %30 : vector<32x1xf32> to vector<32x256xf32>
      %32 = arith.addf %29, %31 : vector<32x256xf32>
      %cst_21 = arith.constant 0.000000e+00 : f32
      %33 = vector.broadcast %cst_21 : f32 to vector<32x256xf32>
      %34 = arith.cmpf oge, %32, %33 : vector<32x256xf32>
      %cst_22 = arith.constant 1.000000e-01 : f32
      %35 = vector.broadcast %cst_22 : f32 to vector<32x256xf32>
      %36 = arith.mulf %35, %32 : vector<32x256xf32>
      %37 = arith.select %34, %32, %36 : vector<32x256xi1>, vector<32x256xf32>
      %c0_23 = arith.constant 0 : index
      %c0_24 = arith.constant 0 : index
      %38 = vector.load %arg7[%c0_23, %c0_24] : memref<4x32xf32, #tpu.memory_space<vmem>>, vector<4x32xf32>
      %cst_25 = arith.constant dense<0.000000e+00> : vector<4x256xf32>
      %39 = tpu.matmul %38, %37, %cst_25 {dimension_numbers = #tpu.dot_dimension_numbers<[1], [0], [0], [1], [0, 0, 1, 1], [], []>} : vector<4x32xf32>, vector<32x256xf32>, vector<4x256xf32> -> vector<4x256xf32>
      %c0_26 = arith.constant 0 : index
      %c0_27 = arith.constant 0 : index
      %40 = vector.load %arg8[%c0_26, %c0_27] : memref<4x1xf32, #tpu.memory_space<vmem>>, vector<4x1xf32>
      %41 = vector.broadcast %40 : vector<4x1xf32> to vector<4x256xf32>
      %42 = arith.addf %39, %41 : vector<4x256xf32>
      %c0_28 = arith.constant 0 : index
      %c0_29 = arith.constant 0 : index
      %43 = vector.load %arg11[%c0_28, %c0_29] : memref<4x256xf32, #tpu.memory_space<vmem>>, vector<4x256xf32>
      tpu.vector_store %arg11[%c0_28, %c0_29], %42 {strides = array<i32>} : memref<4x256xf32, #tpu.memory_space<vmem>>, vector<4x256xf32>,
    } else {
    }
    %c0 = arith.constant 0 : index
    %c0_1 = arith.constant 0 : index
    %c0_2 = arith.constant 0 : index
    %3 = vector.load %arg9[%c0, %c0_1, %c0_2] : memref<1x4x256xf32, #tpu.memory_space<vmem>>, vector<1x4x256xf32>
    %c0_3 = arith.constant 0 : index
    %c0_4 = arith.constant 0 : index
    %4 = vector.load %arg11[%c0_3, %c0_4] : memref<4x256xf32, #tpu.memory_space<vmem>>, vector<4x256xf32>
    %5 = vector.shape_cast %4 : vector<4x256xf32> to vector<1x4x256xf32>
    %6 = arith.addf %3, %5 : vector<1x4x256xf32>
    %c0_5 = arith.constant 0 : index
    %c0_6 = arith.constant 0 : index
    %c0_7 = arith.constant 0 : index
    %7 = vector.load %arg10[%c0_5, %c0_6, %c0_7] : memref<1x4x256xf32, #tpu.memory_space<vmem>>, vector<1x4x256xf32>
    tpu.vector_store %arg10[%c0_5, %c0_6, %c0_7], %6 {strides = array<i32>} : memref<1x4x256xf32, #tpu.memory_space<vmem>>, vector<1x4x256xf32>,
    return
  }
  func.func @transform_0(%arg0: i32, %arg1: i32) -> (i32, i32) {
    %c0_i32 = arith.constant 0 : i32
    %c0_i32_0 = arith.constant 0 : i32
    return %c0_i32, %arg0 : i32, i32
  }
  func.func @transform_1(%arg0: i32, %arg1: i32) -> (i32, i32) {
    %c0_i32 = arith.constant 0 : i32
    %c0_i32_0 = arith.constant 0 : i32
    %c0_i32_1 = arith.constant 0 : i32
    return %c0_i32, %c0_i32_0 : i32, i32
  }
  func.func @transform_2(%arg0: i32, %arg1: i32) -> (i32, i32) {
    %c0_i32 = arith.constant 0 : i32
    %c0_i32_0 = arith.constant 0 : i32
    %c0_i32_1 = arith.constant 0 : i32
    return %c0_i32, %c0_i32_0 : i32, i32
  }
  func.func @transform_3(%arg0: i32, %arg1: i32) -> (i32, i32) {
    %c0_i32 = arith.constant 0 : i32
    %c0_i32_0 = arith.constant 0 : i32
    %c0_i32_1 = arith.constant 0 : i32
    return %c0_i32, %c0_i32_0 : i32, i32
  }
  func.func @transform_4(%arg0: i32, %arg1: i32) -> (i32, i32) {
    %c0_i32 = arith.constant 0 : i32
    %c0_i32_0 = arith.constant 0 : i32
    %c0_i32_1 = arith.constant 0 : i32
    return %c0_i32, %c0_i32_0 : i32, i32
  }
  func.func @transform_5(%arg0: i32, %arg1: i32) -> (i32, i32) {
    %c0_i32 = arith.constant 0 : i32
    %c0_i32_0 = arith.constant 0 : i32
    %c0_i32_1 = arith.constant 0 : i32
    return %c0_i32, %c0_i32_0 : i32, i32
  }
  func.func @transform_6(%arg0: i32, %arg1: i32) -> (i32, i32) {
    %c0_i32 = arith.constant 0 : i32
    %c0_i32_0 = arith.constant 0 : i32
    %c0_i32_1 = arith.constant 0 : i32
    return %c0_i32, %c0_i32_0 : i32, i32
  }
  func.func @transform_7(%arg0: i32, %arg1: i32) -> (i32, i32, i32) {
    %c0_i32 = arith.constant 0 : i32
    %c0_i32_0 = arith.constant 0 : i32
    return %arg1, %c0_i32, %arg0 : i32, i32, i32
  }
  func.func @transform_8(%arg0: i32, %arg1: i32) -> (i32, i32, i32) {
    %c0_i32 = arith.constant 0 : i32
    %c0_i32_0 = arith.constant 0 : i32
    return %arg1, %c0_i32, %arg0 : i32, i32, i32
  }
}

</mosaic_0001>

<bundles_post_ra>
// kernel: tpu_custom_call.1
= control target key start
LH: loop header
LB: loop body
LE: loop exit
PB: predicated region body
PF: predicated region fallthrough
CT: control target
= control target key end

     0   :  { %s1196_s0 = inlined_call_operand.vmem [shape: f32[2,256], index: 0, kind: input, shape index: {}]   ;;  %s1197_s1 = inlined_call_operand.vmem [shape: f32[32,2], index: 1, kind: input, shape index: {}]   ;;  %s1198_s2 = inlined_call_operand.vmem [shape: f32[32,1], index: 2, kind: input, shape index: {}]   ;;  %s1199_s3 = inlined_call_operand.vmem [shape: f32[32,32], index: 3, kind: input, shape index: {}]   ;;  %s1200_s4 = inlined_call_operand.vmem [shape: f32[32,1], index: 4, kind: input, shape index: {}]   ;;  %s1201_s5 = inlined_call_operand.vmem [shape: f32[4,32], index: 5, kind: input, shape index: {}]   ;;  %s1202_s6 = inlined_call_operand.vmem [shape: f32[4,1], index: 6, kind: input, shape index: {}]   ;;  %s1203_s7 = inlined_call_operand.vmem [shape: f32[2,4,256], index: 7, kind: input, shape index: {}]   ;;  %s1204_s8 = inlined_call_operand.hbm [shape: f32[2,4,256], index: 8, kind: output, shape index: {}]  }
   0x1   :  { %1206 = sst [smem:[#allocation6_spill]] %s1196_s0 }
   0x2   :  { %1207 = sst [smem:[#allocation7_spill]] %s1197_s1 }
   0x3   :  { %13 = vsyncpa [#allocation4], 0 }
   0x4   :  { %15 = vsyncpa [#allocation4 + $0x1], 0  ;;  %s1017_s27 = smov 0   ;;  %s1019_s28 = smov 0  }
   0x5   :  { %s1021_s29 = smov 0   ;;  %s1023_s30 = smov 0  }
   0x6   :  { %s1025_s9 = smov 0   ;;  %s1027_s10 = smov 0  }
   0x7 LB: > { %s789_s11 = sadd.s32 4294967295, %s968_s10   ;;  %s790_s12 = sadd.s32 4294967294, %s968_s10   ;;  %s968_s10 = sphi %s1027_s10, %s21_s10   ;;  %s964_s9 = sphi %s1025_s9, %s1219_s9   ;;  %s960_s30 = sphi %s1023_s30, %s1218_s30   ;;  %s956_s29 = sphi %s1021_s29, %s1217_s29   ;;  %s952_s28 = sphi %s1019_s28, %s1216_s28   ;;  %s948_s27 = sphi %s1017_s27, %s1215_s27  }
   0x8   : > { %s30_s13 = sadd.s32 1, %s964_s9  ;;  %s222_s14 = sadd.s32 1, %s956_s29 }
   0x9   : > { %p31_p0 = scmp.ge.s32.totalorder %s30_s13, 2  ;;  %p232_p1 = scmp.ne.s32.totalorder %s956_s29, %s952_s28 }
   0xa   : > { %p233_p2 = scmp.eq.s32.totalorder %s789_s11, 1  ;;  %p238_p3 = scmp.ne.s32.totalorder %s952_s28, %s948_s27 }
   0xb   : > { %s1221_s13 = smov (%p31_p0, %s30_s13), 0  ;;  %p239_p5 = scmp.eq.s32.totalorder %s790_s12, 1 }
   0xc   : > { %p1057_p4 = por %p233_p2, %p232_p1  ;;  %s217_s16 = ssub.s32 %s964_s9, %s1221_s13 }
   0xd   : > { %p794_p6 = scmp.ge.s32.totalorder %s968_s10, 1  ;;  %p220_p7 = scmp.eq.s32.totalorder %s217_s16, 0 }
   0xe   : > { %p1064_p8 = por %p239_p5, %p238_p3  ;;  %p297_p9 = scmp.lt.s32.totalorder %s968_s10, 3 }
   0xf   : > { %s1070_s18 = scalar_select %p220_p7, %s956_s29, %s222_s14  }
  0x10   : > { %p298_p10 = pnand %p794_p6, %p297_p9 }
  0x11   : > { %s1205_s19 = sand.u32 (!%p298_p10), 1, %s952_s28   ;;  %p347_p11 = scmp.lt.s32.totalorder (!%p298_p10), %s960_s30, 1 }
  0x12   : > { %301 = sbr.rel (%p298_p10) target bundleno = 489 (0x1e9), region = 52  ;;  %s1076_s20 = sshll.u32 (!%p298_p10), %s1205_s19, 3 }
  0x13   : > { %p798_p12 = scmp.ne.s32.totalorder (!%p298_p10), %s960_s30, 0 }
  0x17   : > { %s348_s21 = scalar_select %p347_p11, %s960_s30, 1 }
  0x18   : > { %360 = sbr.rel (%p798_p12) target bundleno = 474 (0x1da), region = 56  ;;  %s1210_s1 = sld [smem:[#allocation7_spill]] (!%p798_p12) }
  0x19   : > { %s814_s22 = sshll.u32 %s348_s21, 3  ;;  %s1211_s0 = sld [smem:[#allocation6_spill]] (!%p798_p12) }
  0x1a   : > { %s1082_s25 = scalar_lea.vmem %s1203_s7, %s814_s22 }
  0x1d   : > { %v970_v2 = vmov 0   ;;  %v971_v4 = vmov 1   ;;  %v442_v6 = vld [vmem:[%s1198_s2 + $0x18] sm:$0xff]  ;;  %v441_v7 = vld [vmem:[%s1198_s2 + $0x10] sm:$0xff]  ;;  %v439_v8 = vld [vmem:[%s1198_s2] sm:$0xff]  ;;  %vm523_vm8 = vcmask 261120  }
  0x1e   : > { %v365_v0 = vld [vmem:[%s1210_s1 + $0x18] sm:$0xff]  ;;  %v364_v1 = vld [vmem:[%s1210_s1 + $0x10] sm:$0xff]  ;;  %883 = vset.pattern.permute.xlu1 %v970_v2  ;;  %881 = vset.pattern.permute.xlu0 %v970_v2  ;;  %v363_v3 = vld [vmem:[%s1210_s1 + $0x8] sm:$0xff] }
  0x1f   : > { %383 = vperm.xlu0 %881, %v365_v0   ;;  %378 = vperm.xlu1 %883, %v364_v1   ;;  %v362_v5 = vld [vmem:[%s1210_s1] sm:$0xff]  ;;  %v440_v9 = vld [vmem:[%s1198_s2 + $0x8] sm:$0xff]  ;;  %v502_v10 = vld [vmem:[%s1200_s4 + $0x18] sm:$0xff] }
  0x20   : > { %885 = vset.pattern.permute.xlu2 %v970_v2  ;;  %v619_v11 = vld [vmem:[%s1202_s6] sm:$0xf]  ;;  %v501_v12 = vld [vmem:[%s1200_s4 + $0x10] sm:$0xff]  ;;  %v500_v13 = vld [vmem:[%s1200_s4 + $0x8] sm:$0xff] }
  0x21   : > { %373 = vperm.xlu2 %885, %v363_v3   ;;  %v499_v14 = vld [vmem:[%s1200_s4] sm:$0xff] }
  0x22   : > { %v361_v19 = vld [vmem:[%s1211_s0] sm:$0xf] }
  0x23   : > { %v387_v20 = vperm.slane %v361_v19, 0  ;;  %v417_v21 = vperm.slane %v361_v19, 1  ;;  %v418_v22 = vperm.slane %v361_v19, 3  ;;  %v388_v23 = vperm.slane %v361_v19, 2  ;;  %v495_v19 = vld [vmem:[%s1199_s3] sm:$0xff] }
  0x25   : > { %v391_v26 = vperm.slane %v387_v20, 0  ;;  %v421_v27 = vperm.slane %v417_v21, 1  ;;  %v422_v28 = vperm.slane %v418_v22, 1  ;;  %v392_v30 = vperm.slane %v388_v23, 0  ;;  %v498_v20 = vld [vmem:[%s1199_s3 + $0x18] sm:$0xff]  ;;  %v496_v22 = vld [vmem:[%s1199_s3 + $0x8] sm:$0xff] }
  0x26   : > { %v497_v23 = vld [vmem:[%s1199_s3 + $0x10] sm:$0xff] }
  0x27   : > { %882 = vset.pattern.permute.xlu0 %v971_v4  ;;  %884 = vset.pattern.permute.xlu1 %v971_v4 }
  0x28   : > { %414 = vperm.xlu0 %882, %v365_v0   ;;  %410 = vperm.xlu1 %884, %v364_v1  }
  0x29   : > { %886 = vset.pattern.permute.xlu2 %v971_v4 }
  0x2a   : > { %406 = vperm.xlu2 %886, %v363_v3  }
  0x30   : > { %887 = vset.pattern.permute.xlu1 %v970_v2  ;;  %402 = vperm.xlu0 %882, %v362_v5  }
  0x31   : > { %460 = vperm.xlu1 %887, %v442_v6  }
  0x32   : > { %888 = vset.pattern.permute.xlu2 %v970_v2 }
  0x33   : > { %368 = vperm.xlu2 %888, %v362_v5  }
  0x38   : > { %889 = vset.pattern.permute.xlu0 %v970_v2 }
  0x39   : > { %455 = vperm.xlu1 %887, %v441_v7   ;;  %445 = vperm.xlu0 %889, %v439_v8  }
  0x3b   : > { %450 = vperm.xlu2 %888, %v440_v9  }
  0x41   : > { %520 = vperm.xlu1 %887, %v502_v10   ;;  %622 = vperm.xlu0 %889, %v619_v11  }
  0x43   : > { %515 = vperm.xlu2 %888, %v501_v12  }
  0x49   : > { %510 = vperm.xlu1 %887, %v500_v13  }
  0x4b   : > { %505 = vperm.xlu2 %888, %v499_v14  }
  0x7b   : > { %v374_v15 = vpop.permute.xlu2 %373 }
  0x7c   : > { %v395_v33 = vmul.f32 %v391_v26, %v374_v15  ;;  %v396_v40 = vmul.f32 %v392_v30, %v374_v15 }
  0x84   : > { %v407_v18 = vpop.permute.xlu2 %406 }
  0x85   : > { %v425_v34 = vmul.f32 %v421_v27, %v407_v18  ;;  %v426_v41 = vmul.f32 %v422_v28, %v407_v18 }
  0x87   : > { %v433_v43 = vadd.f32 %v425_v34, %v395_v33  ;;  %v434_v54 = vadd.f32 %v426_v41, %v396_v40 }
  0x8d   : > { %v369_v29 = vpop.permute.xlu2 %368 }
  0x8e   : > { %v393_v46 = vmul.f32 %v391_v26, %v369_v29  ;;  %v394_v53 = vmul.f32 %v392_v30, %v369_v29 }
  0x91   : > { %v379_v16 = vpop.permute.xlu1 %378  ;;  %v384_v17 = vpop.permute.xlu0 %383 }
  0x92   : > { %v399_v35 = vmul.f32 %v391_v26, %v384_v17  ;;  %v400_v36 = vmul.f32 %v392_v30, %v384_v17  ;;  %v397_v56 = vmul.f32 %v391_v26, %v379_v16  ;;  %v398_v57 = vmul.f32 %v392_v30, %v379_v16 }
  0x95   : > { %v451_v50 = vpop.permute.xlu2 %450 }
  0x96   : > { %v465_v60 = vadd.f32 %v451_v50, %v433_v43  ;;  %v466_v0 = vadd.f32 %v451_v50, %v434_v54 }
  0x98   : > { %v481_v8 = vmul.f32 0.1, %v465_v60  ;;  %vm473_vm4 = vcmp.ge.f32.partialorder %v465_v60, 0.0  ;;  %v482_v11 = vmul.f32 0.1, %v466_v0  ;;  %vm474_vm5 = vcmp.ge.f32.partialorder %v466_v0, 0.0 }
  0x9a   : > { %v415_v24 = vpop.permute.xlu0 %414  ;;  %v411_v25 = vpop.permute.xlu1 %410  ;;  %v489_v16 = vsel %vm473_vm4, %v465_v60, %v481_v8  ;;  %v490_v17 = vsel %vm474_vm5, %v466_v0, %v482_v11 }
  0x9b   : > { %v429_v31 = vmul.f32 %v421_v27, %v415_v24  ;;  %v430_v32 = vmul.f32 %v422_v28, %v415_v24  ;;  %v427_v47 = vmul.f32 %v421_v27, %v411_v25  ;;  %v428_v48 = vmul.f32 %v422_v28, %v411_v25 }
  0x9d   : > { %v437_v38 = vadd.f32 %v429_v31, %v399_v35  ;;  %v438_v39 = vadd.f32 %v430_v32, %v400_v36  ;;  %v435_v61 = vadd.f32 %v427_v47, %v397_v56  ;;  %v436_v62 = vadd.f32 %v428_v48, %v398_v57 }
  0xa2   : > { %v403_v37 = vpop.permute.xlu0 %402 }
  0xa3   : > { %v461_v42 = vpop.permute.xlu1 %460  ;;  %v423_v49 = vmul.f32 %v421_v27, %v403_v37  ;;  %v424_v55 = vmul.f32 %v422_v28, %v403_v37  ;;  %v516_v27 = vpop.permute.xlu2 %515 }
  0xa4   : > { %v469_v44 = vadd.f32 %v461_v42, %v437_v38  ;;  %v470_v45 = vadd.f32 %v461_v42, %v438_v39 }
  0xa5   : > { %v431_v63 = vadd.f32 %v423_v49, %v393_v46  ;;  %v432_v3 = vadd.f32 %v424_v55, %v394_v53 }
  0xa6   : > { %vm477_vm0 = vcmp.ge.f32.partialorder %v469_v44, 0.0  ;;  %v485_v51 = vmul.f32 0.1, %v469_v44  ;;  %vm478_vm1 = vcmp.ge.f32.partialorder %v470_v45, 0.0  ;;  %v486_v52 = vmul.f32 0.1, %v470_v45 }
  0xa8   : > { %v493_v58 = vsel %vm477_vm0, %v469_v44, %v485_v51  ;;  %v494_v59 = vsel %vm478_vm1, %v470_v45, %v486_v52  ;;  %vm671_vm1 = vcmask 1043456  }
  0xa9   : > { %548 = vmatpush.msra.mxu0 %v493_v58  ;;  %816 = vmatpush.msra.mxu2 %v493_v58  ;;  %v618_v58 = vld [vmem:[%s1201_s5] sm:$0xf] }
  0xaa   : > { %577 = vmatpush.msra.mxu1 %v494_v59  ;;  %820 = vmatpush.msra.mxu3 %v494_v59 }
  0xab   : > { %v456_v1 = vpop.permute.xlu1 %455  ;;  %v446_v2 = vpop.permute.xlu0 %445 }
  0xac   : > { %v467_v4 = vadd.f32 %v456_v1, %v435_v61  ;;  %v468_v5 = vadd.f32 %v456_v1, %v436_v62  ;;  %v463_v6 = vadd.f32 %v446_v2, %v431_v63  ;;  %v464_v7 = vadd.f32 %v446_v2, %v432_v3  ;;  %v506_v40 = vpop.permute.xlu2 %505 }
  0xae   : > { %vm475_vm2 = vcmp.ge.f32.partialorder %v467_v4, 0.0  ;;  %v483_v9 = vmul.f32 0.1, %v467_v4  ;;  %vm476_vm3 = vcmp.ge.f32.partialorder %v468_v5, 0.0  ;;  %v484_v10 = vmul.f32 0.1, %v468_v5 }
  0xaf   : > { %v479_v14 = vmul.f32 0.1, %v463_v6  ;;  %vm471_vm6 = vcmp.ge.f32.partialorder %v463_v6, 0.0  ;;  %v480_v15 = vmul.f32 0.1, %v464_v7  ;;  %vm472_vm7 = vcmp.ge.f32.partialorder %v464_v7, 0.0 }
  0xb0   : > { %v491_v12 = vsel %vm475_vm2, %v467_v4, %v483_v9  ;;  %v492_v13 = vsel %vm476_vm3, %v468_v5, %v484_v10 }
  0xb1   : > { %549 = vmatpush.msra.mxu0 %v491_v12  ;;  %817 = vmatpush.msra.mxu2 %v491_v12  ;;  %v487_v18 = vsel %vm471_vm6, %v463_v6, %v479_v14  ;;  %v488_v21 = vsel %vm472_vm7, %v464_v7, %v480_v15 }
  0xb2   : > { %578 = vmatpush.msra.mxu1 %v492_v13  ;;  %821 = vmatpush.msra.mxu3 %v492_v13 }
  0xb3   : > { %550 = vmatpush.msra.mxu0 %v489_v16  ;;  %818 = vmatpush.msra.mxu2 %v489_v16  ;;  %v521_v26 = vpop.permute.xlu1 %520  ;;  %v623_v61 = vpop.permute.xlu0 %622 }
  0xb4   : > { %579 = vmatpush.msra.mxu1 %v490_v17  ;;  %822 = vmatpush.msra.mxu3 %v490_v17 }
  0xb5   : > { %551 = vmatpush.msra.mxu0 %v487_v18  ;;  %819 = vmatpush.msra.mxu2 %v487_v18 }
  0xb6   : > { %580 = vmatpush.msra.mxu1 %v488_v21  ;;  %823 = vmatpush.msra.mxu3 %v488_v21 }
  0xb7   : > { %799 = vmatmul.msk.f32.vlgmr.msra.gmra.mxu0 %vm523_vm8, %v495_v19  ;;  %802 = vmatmul.msk.f32.vlgmr.msra.gmra.mxu2 %vm523_vm8, %v498_v20 }
  0xb8   : > { %803 = vmatmul.msk.f32.vlgmr.msra.gmra.mxu1 %vm523_vm8, %v495_v19  ;;  %806 = vmatmul.msk.f32.vlgmr.msra.gmra.mxu3 %vm523_vm8, %v498_v20 }
  0xbb   : > { %v511_v38 = vpop.permute.xlu1 %510 }
  0xbf   : > { %800 = vmatmul.msk.f32.gmra.mxu0 %vm523_vm8, %v496_v22 }
  0xc0   : > { %804 = vmatmul.msk.f32.gmra.mxu1 %vm523_vm8, %v496_v22 }
  0xc7   : > { %801 = vmatmul.msk.f32.gmra.mxu0 %vm523_vm8, %v497_v23 }
  0xc8   : > { %805 = vmatmul.msk.f32.gmra.mxu1 %vm523_vm8, %v497_v23 }
 0x134   : > { %v553_v24 = vpop.f32.mrf.mxu0 }
 0x135   : > { %v582_v25 = vpop.f32.mrf.mxu1  ;;  %v554_v43 = vadd.f32 %v553_v24, %v506_v40 }
 0x136   : > { %v583_v46 = vadd.f32 %v582_v25, %v506_v40 }
 0x137   : > { %v602_v53 = vmul.f32 0.1, %v554_v43  ;;  %vm594_vm15 = vcmp.ge.f32.partialorder %v554_v43, 0.0 }
 0x138   : > { %v603_v55 = vmul.f32 0.1, %v583_v46  ;;  %vm595_vm0 = vcmp.ge.f32.partialorder %v583_v46, 0.0 }
 0x139   : > { %v610_v59 = vsel %vm594_vm15, %v554_v43, %v602_v53 }
 0x13a   : > { %v562_v28 = vpop.f32.mrf.mxu2  ;;  %v611_v60 = vsel %vm595_vm0, %v583_v46, %v603_v55 }
 0x13b   : > { %v563_v29 = vadd.f32 %v562_v28, %v521_v26  ;;  %v591_v30 = vpop.f32.mrf.mxu3 }
 0x13c   : > { %v592_v31 = vadd.f32 %v591_v30, %v521_v26  ;;  %v556_v32 = vpop.f32.mrf.mxu0 }
 0x13d   : > { %v585_v33 = vpop.f32.mrf.mxu1  ;;  %vm600_vm9 = vcmp.ge.f32.partialorder %v563_v29, 0.0  ;;  %v608_v34 = vmul.f32 0.1, %v563_v29  ;;  %v557_v39 = vadd.f32 %v556_v32, %v511_v38 }
 0x13e   : > { %vm601_vm10 = vcmp.ge.f32.partialorder %v592_v31, 0.0  ;;  %v609_v35 = vmul.f32 0.1, %v592_v31  ;;  %v586_v41 = vadd.f32 %v585_v33, %v511_v38 }
 0x13f   : > { %v616_v36 = vsel %vm600_vm9, %v563_v29, %v608_v34  ;;  %v604_v49 = vmul.f32 0.1, %v557_v39  ;;  %vm596_vm13 = vcmp.ge.f32.partialorder %v557_v39, 0.0 }
 0x140   : > { %640 = vmatpush.msrb.mxu2 %v616_v36  ;;  %v617_v37 = vsel %vm601_vm10, %v592_v31, %v609_v35  ;;  %v605_v51 = vmul.f32 0.1, %v586_v41  ;;  %vm597_vm14 = vcmp.ge.f32.partialorder %v586_v41, 0.0 }
 0x141   : > { %660 = vmatpush.msrb.mxu3 %v617_v37  ;;  %v612_v56 = vsel %vm596_vm13, %v557_v39, %v604_v49 }
 0x142   : > { %v613_v57 = vsel %vm597_vm14, %v586_v41, %v605_v51 }
 0x144   : > { %v559_v42 = vpop.f32.mrf.mxu0 }
 0x145   : > { %v560_v44 = vadd.f32 %v559_v42, %v516_v27  ;;  %v588_v45 = vpop.f32.mrf.mxu1 }
 0x146   : > { %v589_v47 = vadd.f32 %v588_v45, %v516_v27 }
 0x147   : > { %vm598_vm11 = vcmp.ge.f32.partialorder %v560_v44, 0.0  ;;  %v606_v48 = vmul.f32 0.1, %v560_v44 }
 0x148   : > { %vm599_vm12 = vcmp.ge.f32.partialorder %v589_v47, 0.0  ;;  %v607_v50 = vmul.f32 0.1, %v589_v47 }
 0x149   : > { %v614_v52 = vsel %vm598_vm11, %v560_v44, %v606_v48 }
 0x14a   : > { %641 = vmatpush.msrb.mxu2 %v614_v52  ;;  %v615_v54 = vsel %vm599_vm12, %v589_v47, %v607_v50 }
 0x14b   : > { %661 = vmatpush.msrb.mxu3 %v615_v54 }
 0x14c   : > { %642 = vmatpush.msrb.mxu2 %v612_v56 }
 0x14d   : > { %662 = vmatpush.msrb.mxu3 %v613_v57 }
 0x14e   : > { %643 = vmatpush.msrb.mxu2 %v610_v59 }
 0x14f   : > { %663 = vmatpush.msrb.mxu3 %v611_v60  ;;  %807 = vmatmul.msk.f32.vlgmr.msrb.gmra.mxu2 %vm523_vm8, %v618_v58 }
 0x150   : > { %808 = vmatmul.msk.f32.vlgmr.msrb.gmra.mxu3 %vm523_vm8, %v618_v58 }
 0x1d2   : > { %v645_v62 = vpop.f32.mrf.mxu2 }
 0x1d3   : > { %v665_v63 = vpop.f32.mrf.mxu3  ;;  %v646_v1 = vadd.f32 %v645_v62, %v623_v61 }
 0x1d4   : > { %v666_v0 = vadd.f32 %v665_v63, %v623_v61 }
 0x1d6   : > { %v670_v2 = vrot.slane %v666_v0, 4 }
 0x1d8   : > { %v672_v3 = vsel %vm671_vm1, %v646_v1, %v670_v2 }
 0x1d9   : > { %674 = vst [vmem:[#allocation2] sm:$0xff] %v672_v3 }
 0x1da PF: > { %v675_v4 = vld [vmem:[%s1082_s25] sm:$0xff]  ;;  %s815_s24 = sshll.u32 %s960_s30, 3  ;;  %s1212_s14 = scalar_lea.vmem [#allocation3], %s1076_s20 }
 0x1db   : > { %s693_s12 = scalar_lea.hbm %s1204_s8, %s815_s24  ;;  %s695_s16 = sshll.u32 %s1212_s14, 4  ;;  %s696_s16 = int_to_ptr.vmem [resolvable:$true] %s695_s16 }
 0x1dc   : > { %s697_s21 = sshll.u32 %s693_s12, 4  ;;  %s1213_s22 = smov %s1212_s14  ;;  %s698_s21 = int_to_ptr.hbm [resolvable:$true] %s697_s21 }
 0x1dd   : > { %s1214_s26 = sand.u32 1, %s952_s28   ;;  %s904_s0 = sshra.s32 %s698_s21, 4  ;;  %s905_s0 = int_to_ptr.hbm [resolvable:$true] %s904_s0 }
 0x1de   : > { %s680_s23 = scalar_lea.sflag [#allocation4], %s1214_s26  ;;  %s906_s1 = scalar_lea.hbm %s905_s0, 8 }
 0x1df   : > { %p907_p13 = scmp.ne.s32.totalorder %s905_s0, %s906_s1  ;;  %s910_s24 = scalar_lea.hbm %s1204_s8, 16 }
 0x1e0   : > { %v676_v5 = vld [vmem:[#allocation2] sm:$0xff]  ;;  %p911_p2 = scmp.lt.s32.totalorder %s905_s0, %s1204_s8  ;;  %p912_p3 = scmp.lt.s32.totalorder %s910_s24, %s906_s1 }
 0x1e1   : > { %v677_v6 = vadd.f32 %v676_v5, %v675_v4  ;;  %p908_p0 = pnand %p907_p13, %p1057_p4 }
 0x1e2   : > { %p913_p5 = por %p912_p3, %p911_p2 }
 0x1e3   : > { %678 = vst [vmem:[%s1213_s22] sm:$0xff] %v677_v6  ;;  %p909_p1 = pneg %p908_p0 }
 0x1e5   : > { %p914_p6 = pnand %p913_p5, %p909_p1 }
 0x1e7   : > { %917 = shalt.err (!%p914_p6)
}
 0x1e8   : > { %824 = dma.vmem_to_hbm [thread:$0]  (%p1057_p4), %s696_s16, 128, %s698_s21, %s680_s23  }
 0x1e9 PF: > { %p830_p7 = scmp.ge.s32.totalorder %s968_s10, 2  ;;  %s709_s20 = sand.u32 1, %s948_s27  }
 0x1ea   : > { %s710_s12 = scalar_lea.sflag [#allocation4], %s709_s20 }
 0x1eb   : > { %p827_p9 = pnand %p830_p7, %p1064_p8 }
 0x1ed   : > { %p828_p10 = pneg %p827_p9 }
 0x1ef   : > { %943 = dma.done.wait (%p828_p10), %s710_s12, 128  }
 0x1f0   : > { %945 = vsyncadd (%p828_p10), %s710_s12, 4294967168  ;;  %s21_s10 = sadd.s32 1, %s968_s10   ;;  %s1215_s27 = smov %s952_s28 }
 0x1f1   : > { %p18_p11 = scmp.ge.s32.totalorder %s21_s10, 4   ;;  %s1216_s28 = smov %s956_s29 }
 0x1f2   : > { %s1217_s29 = smov %s1070_s18  ;;  %s1218_s30 = smov %s964_s9 }
 0x1f3   : > { %s1219_s9 = smov %s1221_s13  ;;  %20 = sbr.rel (!%p18_p11) target bundleno = 7 (0x7), region = 94 }
 0x1f8   :  { %716 = vsyncpa [#allocation4], 1 }
 0x1f9   :  { %718 = vsyncpa [#allocation4 + $0x1], 1 }

</bundles_post_ra>
